<compile_context>
chip_gen: v6e
topology: v6e:2x2x1
jax: 0.10.0
libtpu: 0.0.40
codegen_flags: <defaults>
</compile_context>

<pallas_src>
import jax
import jax.numpy as jnp
from jax.experimental import pallas as pl
from jax.experimental.pallas import tpu as pltpu


# ---------------------------------------------------------------------------
# Primary path: identity with no data movement inside the kernel.
# ---------------------------------------------------------------------------
def _identity_alias_kernel(x_ref, o_ref):
    # The output HBM buffer aliases the input buffer, so the data is already
    # in place.  touch() records a fake read+write dependency on the aliased
    # output so it counts as produced, without emitting any DMA.
    del x_ref
    pltpu.touch(o_ref)


def _identity_no_dma(x: jax.Array) -> jax.Array:
    return pl.pallas_call(
        _identity_alias_kernel,
        out_shape=jax.ShapeDtypeStruct(x.shape, x.dtype),
        in_specs=[pl.BlockSpec(memory_space=pl.ANY)],   # raw HBM ref, no auto-DMA
        out_specs=pl.BlockSpec(memory_space=pl.ANY),
        input_output_aliases={0: 0},                    # output IS the input buffer
        compiler_params=pltpu.CompilerParams(has_side_effects=True),
    )(x)


# ---------------------------------------------------------------------------
# Fallback path: lane-dense streaming copy (only used if the no-DMA variant
# fails to lower on some backend).
# ---------------------------------------------------------------------------
def _copy_kernel(x_ref, o_ref):
    o_ref[...] = x_ref[...]


def _row_granularity(itemsize: int) -> int:
    # Sub-32-bit dtypes pack 2/4 rows per sublane; keep tiles on native
    # (8,128)/(16,128)/(32,128) boundaries.
    if itemsize >= 4:
        return 8
    if itemsize == 2:
        return 16
    return 32


def _lane_dense_cols(total: int):
    """Widest lane-dense (multiple-of-128) trailing dim that divides total."""
    for cols in (32768, 16384, 8192, 4096, 2048, 1024, 512, 256, 128):
        if total % cols == 0:
            return cols
    return None


def _choose_tile_rows(rows: int, cols: int, itemsize: int,
                      target_bytes: int = 4 << 20) -> int:
    """Fixed ~4 MiB block; grid uses cdiv so the last block may be partial."""
    g = _row_granularity(itemsize)
    if rows <= g:
        return rows                         # full-extent rows: always legal
    row_bytes = max(1, cols * itemsize)
    tile = (target_bytes // row_bytes) // g * g
    tile = min(tile, (rows // g) * g)        # stay a multiple of g, <= rows
    return max(g, tile)


def _identity_copy(x: jax.Array) -> jax.Array:
    orig_shape = x.shape
    dtype = x.dtype
    total = int(x.size)
    itemsize = jnp.dtype(dtype).itemsize

    cols = _lane_dense_cols(total)
    if cols is None:
        # Lane-sparse total (not a multiple of 128).
        if total * itemsize <= (8 << 20):
            rows, cols = 1, total            # single full-extent block
        else:
            # TODO(synk): huge non-128-multiple totals skip the kernel and
            # return the input directly (the op is a pure identity anyway).
            return x
    else:
        rows = total // cols

    x2d = x.reshape(rows, cols)
    tile_r = _choose_tile_rows(rows, cols, itemsize)
    grid = (pl.cdiv(rows, tile_r),)          # partial last block is clipped

    out2d = pl.pallas_call(
        _copy_kernel,
        out_shape=jax.ShapeDtypeStruct((rows, cols), dtype),
        grid=grid,
        in_specs=[pl.BlockSpec((tile_r, cols), lambda i: (i, 0))],
        out_specs=pl.BlockSpec((tile_r, cols), lambda i: (i, 0)),
        input_output_aliases={0: 0},
        compiler_params=pltpu.CompilerParams(
            dimension_semantics=("parallel",),   # shard row blocks across TCs
            vmem_limit_bytes=32 << 20,           # 4x(~4 MiB) footprint fits v5e/v6e/v7x
        ),
        cost_estimate=pl.CostEstimate(
            flops=0, transcendentals=0,
            bytes_accessed=2 * total * itemsize,
        ),
    )(x2d)
    return out2d.reshape(orig_shape)


# ---------------------------------------------------------------------------
# Public wrapper (IdentityNet.forward).
# ---------------------------------------------------------------------------
def identity_net(x: jax.Array) -> jax.Array:
    """Pallas implementation of IdentityNet.forward: returns input unchanged.

    For a true zero-copy identity, call via
    jax.jit(identity_net, donate_argnums=0) so the aliased output reuses the
    input's HBM buffer instead of triggering a defensive copy.
    """
    if x.size == 0:
        return x
    try:
        return _identity_no_dma(x)
    except Exception:
        # Extremely defensive: if the zero-DMA variant fails to lower on this
        # backend, fall back to the optimized streaming copy.
        return _identity_copy(x)


if __name__ == "__main__":
    key = jax.random.PRNGKey(0)
    # Small image-feature-like input (the module is used on image feature tensors).
    x = jax.random.normal(key, (2, 4, 16, 16), dtype=jnp.float32)

    y = identity_net(x)
    y = jax.block_until_ready(y)

    assert y.shape == x.shape, (y.shape, x.shape)
    assert y.dtype == x.dtype, (y.dtype, x.dtype)
    assert bool(jnp.all(y == x)), "identity kernel output mismatch"

    print("KERNEL_OK")
</pallas_src>

<mosaic_0001>
module attributes {stable_mosaic.version = 11 : i64} {
  func.func @_identity_alias_kernel(%arg0: memref<2x4x16x16xf32, #tpu.memory_space<any>>, %arg1: memref<2x4x16x16xf32, #tpu.memory_space<any>>) attributes {dimension_semantics = [], scalar_prefetch = 0 : i64, scratch_operands = 0 : i64, tpu.core_type = #tpu.core_type<tc>} {
    return
  }
}

module attributes {stable_mosaic.version = 11 : i64} {
  func.func @_copy_kernel(%arg0: i32, %arg1: memref<1x2048xf32, #tpu.memory_space<vmem>>, %arg2: memref<1x2048xf32, #tpu.memory_space<vmem>>) attributes {dimension_semantics = [#tpu.dimension_semantics<parallel>], iteration_bounds = array<i64: 1>, scalar_prefetch = 0 : i64, scratch_operands = 0 : i64, tpu.core_type = #tpu.core_type<tc>, window_params = [{transform_indices = @transform_0, window_bounds = array<i64: 1, 2048>}, {transform_indices = @transform_1, window_bounds = array<i64: 1, 2048>}]} {
    %c0 = arith.constant 0 : index
    %c0_0 = arith.constant 0 : index
    %0 = vector.load %arg1[%c0, %c0_0] : memref<1x2048xf32, #tpu.memory_space<vmem>>, vector<1x2048xf32>
    %c0_1 = arith.constant 0 : index
    %c0_2 = arith.constant 0 : index
    %1 = vector.load %arg2[%c0_1, %c0_2] : memref<1x2048xf32, #tpu.memory_space<vmem>>, vector<1x2048xf32>
    tpu.vector_store %arg2[%c0_1, %c0_2], %0 {strides = array<i32>} : memref<1x2048xf32, #tpu.memory_space<vmem>>, vector<1x2048xf32>,
    return
  }
  func.func @transform_0(%arg0: i32) -> (i32, i32) {
    %c0_i32 = arith.constant 0 : i32
    %c0_i32_0 = arith.constant 0 : i32
    return %arg0, %c0_i32 : i32, i32
  }
  func.func @transform_1(%arg0: i32) -> (i32, i32) {
    %c0_i32 = arith.constant 0 : i32
    %c0_i32_0 = arith.constant 0 : i32
    return %arg0, %c0_i32 : i32, i32
  }
}

</mosaic_0001>

<bundles_post_ra>
// kernel: tpu_custom_call.1
= control target key start
LH: loop header
LB: loop body
LE: loop exit
PB: predicated region body
PF: predicated region fallthrough
CT: control target
= control target key end

     0   :  { %s16_s0 = inlined_call_operand.hbm [shape: f32[2,4,16,16], index: 0, kind: input, shape index: {}, may-alias: {0,1}]   ;;  %s17_s1 = inlined_call_operand.hbm [shape: f32[2,4,16,16], index: 1, kind: output, shape index: {}, may-alias: {0,1}]  }

// kernel: tpu_custom_call.1
= control target key start
LH: loop header
LB: loop body
LE: loop exit
PB: predicated region body
PF: predicated region fallthrough
CT: control target
= control target key end

     0   :  { %6 = vsyncpa [#allocation3], 0  ;;  %s104_s0 = inlined_call_operand.hbm [shape: f32[1,2048], index: 0, kind: input, shape index: {}, may-alias: {0,1}]   ;;  %s105_s1 = inlined_call_operand.hbm [shape: f32[1,2048], index: 1, kind: output, shape index: {}, may-alias: {0,1}]  }
   0x1   :  { %7 = vsyncpa [#allocation4], 0  ;;  %s86_s6 = smov [#allocation2]  }
   0x2   :  { %s14_s7 = sshll.u32 %s86_s6, 4  ;;  %s15_s7 = int_to_ptr.vmem [resolvable:$true] %s14_s7 }
   0x3   :  { %s50_s8 = scalar_lea.vmem %s15_s7, 256  ;;  %p55_p1 = scmp.lt.s32.totalorder %s15_s7, %s15_s7 }
   0x4   :  { %p51_p0 = scmp.ne.s32.totalorder %s15_s7, %s50_s8  ;;  %p56_p2 = scmp.lt.s32.totalorder %s50_s8, %s50_s8 }
   0x6   :  { %p57_p3 = por %p56_p2, %p55_p1 }
   0x8   :  { %p58_p4 = pnand %p57_p3, %p51_p0 }
   0xa   :  { %61 = shalt.err (!%p58_p4)
}
   0xb   :  { %17 = dma.hbm_to_vmem [thread:$0]  %s104_s0, 256, %s15_s7, [#allocation3]  }
   0xc   :  { %82 = dma.done.wait [#allocation3], 256  }
   0xd   :  { %83 = vsyncadd [#allocation3], 4294967040  ;;  %s87_s11 = smov [#allocation5]   ;;  %v21_v0 = vld [vmem:[#allocation2] sm:$0xff]  ;;  %v22_v1 = vld [vmem:[#allocation2 + $0x8] sm:$0xff] }
   0xe   :  { %s31_s12 = sshll.u32 %s87_s11, 4  ;;  %23 = vst [vmem:[#allocation5] sm:$0xff] %v21_v0  ;;  %24 = vst [vmem:[#allocation5 + $0x8] sm:$0xff] %v22_v1  ;;  %s32_s12 = int_to_ptr.vmem [resolvable:$true] %s31_s12 }
   0xf   :  { %s62_s13 = scalar_lea.vmem %s32_s12, 256  ;;  %p67_p6 = scmp.lt.s32.totalorder %s32_s12, %s32_s12 }
  0x10   :  { %p63_p5 = scmp.ne.s32.totalorder %s32_s12, %s62_s13  ;;  %p68_p7 = scmp.lt.s32.totalorder %s62_s13, %s62_s13 }
  0x12   :  { %p69_p8 = por %p68_p7, %p67_p6 }
  0x14   :  { %p70_p9 = pnand %p69_p8, %p63_p5 }
  0x16   :  { %73 = shalt.err (!%p70_p9)
}
  0x17   :  { %34 = dma.vmem_to_hbm [thread:$0]  %s32_s12, 256, %s105_s1, [#allocation4]  }
  0x18   :  { %84 = dma.done.wait [#allocation4], 256  }
  0x19   :  { %85 = vsyncadd [#allocation4], 4294967040 }
  0x1a   :  { %38 = vsyncpa [#allocation3], 1 }
  0x1b   :  { %39 = vsyncpa [#allocation4], 1 }

</bundles_post_ra>
